<compile_context>
chip_gen: v7x
topology: tpu7x:2x2x1
jax: 0.10.0
libtpu: 0.0.40
codegen_flags: <defaults>
</compile_context>

<pallas_src>
import functools
import math
import re

import jax
import jax.numpy as jnp
from jax.experimental import pallas as pl
from jax.experimental.pallas import tpu as pltpu

C1 = 0.01 ** 2
C2 = 0.03 ** 2


def gaussian_1d(window_size: int, sigma: float) -> jnp.ndarray:
    """Same as the PyTorch `gaussian` helper (normalized 1D Gaussian)."""
    xs = jnp.arange(window_size, dtype=jnp.float32)
    g = jnp.exp(-((xs - window_size // 2) ** 2) / float(2 * sigma ** 2))
    return g / jnp.sum(g)


def conv_matrix(n: int, window_size: int, sigma: float, transpose: bool) -> jnp.ndarray:
    """Banded matrix implementing 'same' (zero-padded) 1D Gaussian conv.

    Conv along rows (height):  out = K @ X   with K[i, m]  = g[m - i + pad]
    Conv along cols (width):   out = X @ Kt  with Kt[m, j] = g[m - j + pad]
    """
    g = gaussian_1d(window_size, sigma)
    pad = window_size // 2
    a = jnp.arange(n)
    if transpose:
        off = a[:, None] - a[None, :] + pad
    else:
        off = a[None, :] - a[:, None] + pad
    valid = (off >= 0) & (off < window_size)
    return jnp.where(valid, g[jnp.clip(off, 0, window_size - 1)], 0.0).astype(jnp.float32)


# --------------------------- kernel ---------------------------
def _ssim_kernel(img1_ref, img2_ref, kh_ref, kw_ref, out_ref, *,
                 lanes, tn, width, n_valid, needs_mask):
    """One grid step: TN (batch*channel) slices laid side-by-side along lanes.

    img refs: (1, H, lanes);  kh: (H, H);  kw: block-diag (lanes, lanes).
    """
    x1 = img1_ref[0].astype(jnp.float32)          # (H, lanes)
    x2 = img2_ref[0].astype(jnp.float32)          # (H, lanes)

    # Stage 1 (H-conv): one fused MXU matmul over all five moment maps.
    y = jnp.concatenate([x1, x2, x1 * x1, x2 * x2, x1 * x2], axis=1)   # (H, 5*lanes)
    t = jnp.dot(kh_ref[...], y, preferred_element_type=jnp.float32)    # (H, 5*lanes)

    # Stage 2 (W-conv): block-diagonal (lanes, lanes) KW applied to each of the
    # five lane-slices of t (5x fewer MACs than a (5*lanes)^2 operand).
    kw = kw_ref[...]
    mu1 = jnp.dot(t[:, 0 * lanes:1 * lanes], kw, preferred_element_type=jnp.float32)
    mu2 = jnp.dot(t[:, 1 * lanes:2 * lanes], kw, preferred_element_type=jnp.float32)
    e11 = jnp.dot(t[:, 2 * lanes:3 * lanes], kw, preferred_element_type=jnp.float32)
    e22 = jnp.dot(t[:, 3 * lanes:4 * lanes], kw, preferred_element_type=jnp.float32)
    e12 = jnp.dot(t[:, 4 * lanes:5 * lanes], kw, preferred_element_type=jnp.float32)

    mu1_sq = mu1 * mu1
    mu2_sq = mu2 * mu2
    mu1_mu2 = mu1 * mu2
    sigma1_sq = e11 - mu1_sq
    sigma2_sq = e22 - mu2_sq
    sigma12 = e12 - mu1_mu2

    num = (2.0 * mu1_mu2 + C1) * (2.0 * sigma12 + C2)
    den = (mu1_sq + mu2_sq + C1) * (sigma1_sq + sigma2_sq + C2)
    ssim_map = num * pl.reciprocal(den, approx=True)

    if needs_mask:
        # Zero out lanes that belong to padded (B, C) slices (last grid step).
        g = pl.program_id(0)
        valid_lanes = jnp.clip(n_valid - g * tn, 0, tn) * width
        lane_idx = jax.lax.broadcasted_iota(jnp.int32, ssim_map.shape, 1)
        ssim_map = jnp.where(lane_idx < valid_lanes, ssim_map, 0.0)

    # Per-step partial sum (no shared accumulator -> grid axis can be parallel).
    out_ref[...] = jnp.full((1, 1, 1), jnp.sum(ssim_map), dtype=jnp.float32)


# --------------------------- tiling heuristics ---------------------------
def _cdiv(a, b):
    return -(-a // b)


def _tpu_generation() -> int:
    """Best-effort TPU generation from device_kind; defaults to 6."""
    try:
        kind = jax.devices()[0].device_kind
    except Exception:
        return 6
    m = re.search(r"(\d+)", str(kind))
    return int(m.group(1)) if m else 6


def _choose_tiling(n: int, w: int, num_tensorcores: int, lane_target: int):
    """Pick (TN slices/step, G grid steps, padded slice count N_pad).

    Lane-dense blocks (TN*W a multiple of 128, ~lane_target wide) are the big
    measured lever.  Single-TC chips take the widest step; v7x prefers >=2
    steps only if each step keeps >=128 lanes.
    """
    step = 128 // math.gcd(w, 128)          # TN granularity for 128-aligned lanes
    if w >= lane_target:
        tn = 1                              # already lane-dense enough per slice
    else:
        tn = max(1, lane_target // w)       # ~lane_target lanes per step
        if step * w <= max(2 * lane_target, 256):      # alignment is affordable
            tn = max(step, (tn // step) * step)        # round to 128-aligned lanes
            n_cap = _cdiv(n, step) * step              # don't exceed the padded work
        else:
            n_cap = n
        tn = min(tn, max(n_cap, 1))
    g = _cdiv(n, tn)

    # v7x: two TensorCores only help if both steps stay full-width.
    if num_tensorcores >= 2 and g == 1 and tn > 1:
        half = _cdiv(tn, 2)
        if step * w <= max(2 * lane_target, 256):
            half = _cdiv(half, step) * step
        if half * w >= 128 and half < tn:
            tn = half
            g = _cdiv(n, tn)
    return tn, g, g * tn


def _vmem_limit_bytes(h: int, lanes: int, in_itemsize: int, generation: int) -> int:
    """Derive vmem_limit from actual block sizes (with headroom), cap for v7x."""
    img = 2 * 2 * h * lanes * in_itemsize       # 2 inputs x double-buffered blocks
    kh = 2 * h * h * 4
    kw = 2 * lanes * lanes * 4
    inter = 24 * h * lanes * 4                  # x1,x2, y(5), t(5), blur(5), temps
    est = int((img + kh + kw + inter) * 1.5) + (4 << 20)
    cap = (48 << 20) if generation >= 7 else (100 << 20)
    return max(16 << 20, min(est, cap))


# --------------------------- wrapper ---------------------------
def ssim_pallas(img1, img2, window_size=11, win_sigma=1.5, size_average=True):
    assert img1.shape == img2.shape
    B, C, H, W = img1.shape
    N = B * C

    gen = _tpu_generation()
    num_tc = 2 if gen >= 7 else 1
    lane_target = 256 if gen >= 6 else 128
    TN, G, N_pad = _choose_tiling(N, W, num_tc, lane_target)
    lanes = TN * W
    needs_mask = N_pad > N

    # Lane-dense layout: fold TN slices into the lane axis (wrapper-side
    # reshape/transpose only; images keep their original dtype).
    def to_blocks(x):
        x = x.reshape(N, H, W)
        if N_pad > N:
            x = jnp.concatenate(
                [x, jnp.zeros((N_pad - N, H, W), dtype=x.dtype)], axis=0)
        x = x.reshape(G, TN, H, W)
        x = jnp.transpose(x, (0, 2, 1, 3))
        return x.reshape(G, H, lanes)

    a = to_blocks(img1)
    b = to_blocks(img2)

    kh = conv_matrix(H, window_size, win_sigma, transpose=False)     # (H, H)
    kw = conv_matrix(W, window_size, win_sigma, transpose=True)      # (W, W)
    # Block-diagonal W-conv matrix: applies KW independently to every W-chunk
    # of one lane-group in a single (lanes, lanes) matmul.
    kw_bd = jnp.kron(jnp.eye(TN, dtype=jnp.float32), kw)             # (lanes, lanes)

    img_spec = pl.BlockSpec((1, H, lanes), lambda g: (g, 0, 0))
    kh_spec = pl.BlockSpec((H, H), lambda g: (0, 0))
    kw_spec = pl.BlockSpec((lanes, lanes), lambda g: (0, 0))
    out_spec = pl.BlockSpec((1, 1, 1), lambda g: (g, 0, 0))
    # TODO(synk): constant-index kh/kw blocks could request single buffering
    #             (pipeline_mode); negligible at these sizes.

    kernel = functools.partial(
        _ssim_kernel, lanes=lanes, tn=TN, width=W, n_valid=N, needs_mask=needs_mask)

    partials = pl.pallas_call(
        kernel,
        out_shape=jax.ShapeDtypeStruct((G, 1, 1), jnp.float32),
        grid_spec=pltpu.PrefetchScalarGridSpec(
            num_scalar_prefetch=0,
            grid=(G,),
            in_specs=[img_spec, img_spec, kh_spec, kw_spec],
            out_specs=out_spec,
        ),
        compiler_params=pltpu.CompilerParams(
            dimension_semantics=("parallel",),
            vmem_limit_bytes=_vmem_limit_bytes(H, lanes, img1.dtype.itemsize, gen),
        ),
    )(a, b, kh, kw_bd)

    if size_average:
        return jnp.sum(partials) / float(B * C * H * W)
    # TODO(synk): size_average=False path (per-image mean) not needed for default config.
    raise NotImplementedError("size_average=False not implemented")


# ------------------------- pure-JAX reference -------------------------
def _ssim_reference(img1, img2, window_size=11, win_sigma=1.5):
    B, C, H, W = img1.shape
    g = gaussian_1d(window_size, win_sigma)
    w2d = jnp.outer(g, g)                                   # (ws, ws)
    window = jnp.broadcast_to(w2d, (C, 1, window_size, window_size))
    pad = window_size // 2

    def conv(x):
        return jax.lax.conv_general_dilated(
            x, window,
            window_strides=(1, 1),
            padding=[(pad, pad), (pad, pad)],
            dimension_numbers=("NCHW", "OIHW", "NCHW"),
            feature_group_count=C,
        )

    mu1, mu2 = conv(img1), conv(img2)
    mu1_sq, mu2_sq, mu1_mu2 = mu1 * mu1, mu2 * mu2, mu1 * mu2
    sigma1_sq = conv(img1 * img1) - mu1_sq
    sigma2_sq = conv(img2 * img2) - mu2_sq
    sigma12 = conv(img1 * img2) - mu1_mu2
    ssim_map = ((2 * mu1_mu2 + C1) * (2 * sigma12 + C2)) / (
        (mu1_sq + mu2_sq + C1) * (sigma1_sq + sigma2_sq + C2)
    )
    return jnp.mean(ssim_map)


if __name__ == "__main__":
    key = jax.random.PRNGKey(0)
    k1, k2 = jax.random.split(key)
    B, C, H, W = 2, 3, 16, 16
    img1 = jax.random.uniform(k1, (B, C, H, W), dtype=jnp.float32)
    img2 = jax.random.uniform(k2, (B, C, H, W), dtype=jnp.float32)

    out = ssim_pallas(img1, img2)
    out = jax.block_until_ready(out)

    ref = jax.block_until_ready(_ssim_reference(img1, img2))
    assert jnp.allclose(out, ref, rtol=1e-3, atol=1e-3), (out, ref)

    print("KERNEL_OK")
</pallas_src>

<mosaic_0001>
module attributes {stable_mosaic.version = 11 : i64} {
  func.func @_ssim_kernel(%arg0: i32, %arg1: memref<1x16x128xf32, #tpu.memory_space<vmem>>, %arg2: memref<1x16x128xf32, #tpu.memory_space<vmem>>, %arg3: memref<16x16xf32, #tpu.memory_space<vmem>>, %arg4: memref<128x128xf32, #tpu.memory_space<vmem>>, %arg5: memref<1x1x1xf32, #tpu.memory_space<vmem>>) attributes {dimension_semantics = [#tpu.dimension_semantics<parallel>], iteration_bounds = array<i64: 1>, scalar_prefetch = 0 : i64, scratch_operands = 0 : i64, tpu.core_type = #tpu.core_type<tc>, window_params = [{transform_indices = @transform_0, window_bounds = array<i64: 1, 16, 128>}, {transform_indices = @transform_1, window_bounds = array<i64: 1, 16, 128>}, {pipeline_mode = #tpu.pipeline_mode<synchronous>, transform_indices = @transform_2, window_bounds = array<i64: 16, 16>}, {pipeline_mode = #tpu.pipeline_mode<synchronous>, transform_indices = @transform_3, window_bounds = array<i64: 128, 128>}, {transform_indices = @transform_4, window_bounds = array<i64: 1, 1, 1>}]} {
    %c0 = arith.constant 0 : index
    %c0_0 = arith.constant 0 : index
    %c0_1 = arith.constant 0 : index
    %0 = vector.load %arg1[%c0, %c0_0, %c0_1] : memref<1x16x128xf32, #tpu.memory_space<vmem>>, vector<1x16x128xf32>
    %1 = vector.shape_cast %0 : vector<1x16x128xf32> to vector<16x128xf32>
    %c0_2 = arith.constant 0 : index
    %c0_3 = arith.constant 0 : index
    %c0_4 = arith.constant 0 : index
    %2 = vector.load %arg2[%c0_2, %c0_3, %c0_4] : memref<1x16x128xf32, #tpu.memory_space<vmem>>, vector<1x16x128xf32>
    %3 = vector.shape_cast %2 : vector<1x16x128xf32> to vector<16x128xf32>
    %4 = arith.mulf %1, %1 : vector<16x128xf32>
    %5 = arith.mulf %3, %3 : vector<16x128xf32>
    %6 = arith.mulf %1, %3 : vector<16x128xf32>
    %7 = tpu.concatenate %1, %3, %4, %5, %6 in 1 : vector<16x128xf32>, vector<16x128xf32>, vector<16x128xf32>, vector<16x128xf32>, vector<16x128xf32> -> vector<16x640xf32>
    %c0_5 = arith.constant 0 : index
    %c0_6 = arith.constant 0 : index
    %8 = vector.load %arg3[%c0_5, %c0_6] : memref<16x16xf32, #tpu.memory_space<vmem>>, vector<16x16xf32>
    %cst = arith.constant dense<0.000000e+00> : vector<16x640xf32>
    %9 = tpu.matmul %8, %7, %cst {dimension_numbers = #tpu.dot_dimension_numbers<[1], [0], [0], [1], [0, 0, 1, 1], [], []>} : vector<16x16xf32>, vector<16x640xf32>, vector<16x640xf32> -> vector<16x640xf32>
    %c0_7 = arith.constant 0 : index
    %c0_8 = arith.constant 0 : index
    %10 = vector.load %arg4[%c0_7, %c0_8] : memref<128x128xf32, #tpu.memory_space<vmem>>, vector<128x128xf32>
    %11 = vector.extract_strided_slice %9 {offsets = [0, 0], sizes = [16, 128], strides = [1, 1]} : vector<16x640xf32> to vector<16x128xf32>
    %cst_9 = arith.constant dense<0.000000e+00> : vector<16x128xf32>
    %12 = tpu.matmul %11, %10, %cst_9 {dimension_numbers = #tpu.dot_dimension_numbers<[1], [0], [0], [1], [0, 0, 1, 1], [], []>} : vector<16x128xf32>, vector<128x128xf32>, vector<16x128xf32> -> vector<16x128xf32>
    %13 = vector.extract_strided_slice %9 {offsets = [0, 128], sizes = [16, 128], strides = [1, 1]} : vector<16x640xf32> to vector<16x128xf32>
    %cst_10 = arith.constant dense<0.000000e+00> : vector<16x128xf32>
    %14 = tpu.matmul %13, %10, %cst_10 {dimension_numbers = #tpu.dot_dimension_numbers<[1], [0], [0], [1], [0, 0, 1, 1], [], []>} : vector<16x128xf32>, vector<128x128xf32>, vector<16x128xf32> -> vector<16x128xf32>
    %15 = vector.extract_strided_slice %9 {offsets = [0, 256], sizes = [16, 128], strides = [1, 1]} : vector<16x640xf32> to vector<16x128xf32>
    %cst_11 = arith.constant dense<0.000000e+00> : vector<16x128xf32>
    %16 = tpu.matmul %15, %10, %cst_11 {dimension_numbers = #tpu.dot_dimension_numbers<[1], [0], [0], [1], [0, 0, 1, 1], [], []>} : vector<16x128xf32>, vector<128x128xf32>, vector<16x128xf32> -> vector<16x128xf32>
    %17 = vector.extract_strided_slice %9 {offsets = [0, 384], sizes = [16, 128], strides = [1, 1]} : vector<16x640xf32> to vector<16x128xf32>
    %cst_12 = arith.constant dense<0.000000e+00> : vector<16x128xf32>
    %18 = tpu.matmul %17, %10, %cst_12 {dimension_numbers = #tpu.dot_dimension_numbers<[1], [0], [0], [1], [0, 0, 1, 1], [], []>} : vector<16x128xf32>, vector<128x128xf32>, vector<16x128xf32> -> vector<16x128xf32>
    %19 = vector.extract_strided_slice %9 {offsets = [0, 512], sizes = [16, 128], strides = [1, 1]} : vector<16x640xf32> to vector<16x128xf32>
    %cst_13 = arith.constant dense<0.000000e+00> : vector<16x128xf32>
    %20 = tpu.matmul %19, %10, %cst_13 {dimension_numbers = #tpu.dot_dimension_numbers<[1], [0], [0], [1], [0, 0, 1, 1], [], []>} : vector<16x128xf32>, vector<128x128xf32>, vector<16x128xf32> -> vector<16x128xf32>
    %21 = arith.mulf %12, %12 : vector<16x128xf32>
    %22 = arith.mulf %14, %14 : vector<16x128xf32>
    %23 = arith.mulf %12, %14 : vector<16x128xf32>
    %24 = arith.subf %16, %21 : vector<16x128xf32>
    %25 = arith.subf %18, %22 : vector<16x128xf32>
    %26 = arith.subf %20, %23 : vector<16x128xf32>
    %cst_14 = arith.constant 2.000000e+00 : f32
    %27 = vector.broadcast %cst_14 : f32 to vector<16x128xf32>
    %28 = arith.mulf %27, %23 : vector<16x128xf32>
    %cst_15 = arith.constant 9.99999974E-5 : f32
    %29 = vector.broadcast %cst_15 : f32 to vector<16x128xf32>
    %30 = arith.addf %28, %29 : vector<16x128xf32>
    %cst_16 = arith.constant 2.000000e+00 : f32
    %31 = vector.broadcast %cst_16 : f32 to vector<16x128xf32>
    %32 = arith.mulf %31, %26 : vector<16x128xf32>
    %cst_17 = arith.constant 8.99999984E-4 : f32
    %33 = vector.broadcast %cst_17 : f32 to vector<16x128xf32>
    %34 = arith.addf %32, %33 : vector<16x128xf32>
    %35 = arith.mulf %30, %34 : vector<16x128xf32>
    %36 = arith.addf %21, %22 : vector<16x128xf32>
    %cst_18 = arith.constant 9.99999974E-5 : f32
    %37 = vector.broadcast %cst_18 : f32 to vector<16x128xf32>
    %38 = arith.addf %36, %37 : vector<16x128xf32>
    %39 = arith.addf %24, %25 : vector<16x128xf32>
    %cst_19 = arith.constant 8.99999984E-4 : f32
    %40 = vector.broadcast %cst_19 : f32 to vector<16x128xf32>
    %41 = arith.addf %39, %40 : vector<16x128xf32>
    %42 = arith.mulf %38, %41 : vector<16x128xf32>
    %43 = tpu.reciprocal %42 {approx = true} : vector<16x128xf32> -> vector<16x128xf32>
    %44 = arith.mulf %35, %43 : vector<16x128xf32>
    %c8_i32 = arith.constant 8 : i32
    %45 = arith.muli %arg0, %c8_i32 : i32
    %c6_i32 = arith.constant 6 : i32
    %46 = arith.subi %c6_i32, %45 : i32
    %c0_i32 = arith.constant 0 : i32
    %c8_i32_20 = arith.constant 8 : i32
    %47 = arith.maxsi %c0_i32, %46 : i32
    %48 = arith.minsi %c8_i32_20, %47 : i32
    %c16_i32 = arith.constant 16 : i32
    %49 = arith.muli %48, %c16_i32 : i32
    %50 = tpu.iota {dimensions = array<i32: 1>} : vector<16x128xi32>
    %51 = vector.broadcast %49 : i32 to vector<16x128xi32>
    %52 = arith.cmpi slt, %50, %51 : vector<16x128xi32>
    %cst_21 = arith.constant 0.000000e+00 : f32
    %53 = vector.broadcast %cst_21 : f32 to vector<16x128xf32>
    %54 = arith.select %52, %44, %53 : vector<16x128xi1>, vector<16x128xf32>
    %55 = vector.shape_cast %54 : vector<16x128xf32> to vector<1x16x128xf32>
    %cst_22 = arith.constant dense<0.000000e+00> : vector<1xf32>
    %56 = vector.multi_reduction <add>, %55, %cst_22 [1, 2] : vector<1x16x128xf32> to vector<1xf32>
    %57 = vector.shape_cast %56 : vector<1xf32> to vector<1x1x1xf32>
    %58 = vector.extract %57[0, 0, 0] : f32 from vector<1x1x1xf32>
    %59 = vector.broadcast %58 : f32 to vector<1x1x1xf32>
    %c0_23 = arith.constant 0 : index
    %c0_24 = arith.constant 0 : index
    %c0_25 = arith.constant 0 : index
    %60 = vector.load %arg5[%c0_23, %c0_24, %c0_25] : memref<1x1x1xf32, #tpu.memory_space<vmem>>, vector<1x1x1xf32>
    tpu.vector_store %arg5[%c0_23, %c0_24, %c0_25], %59 {strides = array<i32>} : memref<1x1x1xf32, #tpu.memory_space<vmem>>, vector<1x1x1xf32>,
    return
  }
  func.func @transform_0(%arg0: i32) -> (i32, i32, i32) {
    %c0_i32 = arith.constant 0 : i32
    %c0_i32_0 = arith.constant 0 : i32
    %c0_i32_1 = arith.constant 0 : i32
    return %arg0, %c0_i32, %c0_i32_0 : i32, i32, i32
  }
  func.func @transform_1(%arg0: i32) -> (i32, i32, i32) {
    %c0_i32 = arith.constant 0 : i32
    %c0_i32_0 = arith.constant 0 : i32
    %c0_i32_1 = arith.constant 0 : i32
    return %arg0, %c0_i32, %c0_i32_0 : i32, i32, i32
  }
  func.func @transform_2(%arg0: i32) -> (i32, i32) {
    %c0_i32 = arith.constant 0 : i32
    %c0_i32_0 = arith.constant 0 : i32
    %c0_i32_1 = arith.constant 0 : i32
    return %c0_i32, %c0_i32_0 : i32, i32
  }
  func.func @transform_3(%arg0: i32) -> (i32, i32) {
    %c0_i32 = arith.constant 0 : i32
    %c0_i32_0 = arith.constant 0 : i32
    %c0_i32_1 = arith.constant 0 : i32
    return %c0_i32, %c0_i32_0 : i32, i32
  }
  func.func @transform_4(%arg0: i32) -> (i32, i32, i32) {
    %c0_i32 = arith.constant 0 : i32
    %c0_i32_0 = arith.constant 0 : i32
    %c0_i32_1 = arith.constant 0 : i32
    return %arg0, %c0_i32, %c0_i32_0 : i32, i32, i32
  }
}

</mosaic_0001>

<bundles_post_ra>
// kernel: tpu_custom_call.1
= control target key start
LH: loop header
LB: loop body
LE: loop exit
PB: predicated region body
PF: predicated region fallthrough
CT: control target
= control target key end

     0   :  { %9 = vsyncpa [#allocation3], 0  ;;  %s1598_s0 = inlined_call_operand.hbm [shape: f32[1,16,128], index: 0, kind: input, shape index: {}]   ;;  %s1599_s1 = inlined_call_operand.hbm [shape: f32[1,16,128], index: 1, kind: input, shape index: {}]   ;;  %s1600_s2 = inlined_call_operand.hbm [shape: f32[16,16], index: 2, kind: input, shape index: {}]   ;;  %s1601_s3 = inlined_call_operand.hbm [shape: f32[128,128], index: 3, kind: input, shape index: {}]   ;;  %s1602_s4 = inlined_call_operand.hbm [shape: f32[1,1,1], index: 4, kind: output, shape index: {}]  }
   0x1   :  { %10 = vsyncpa [#allocation6], 0 }
   0x2   :  { %11 = vsyncpa [#allocation9], 0 }
   0x3   :  { %12 = vsyncpa [#allocation4], 0  ;;  %s1377_s15 = smov [#allocation5]   ;;  %s1378_s17 = smov [#allocation2]  }
   0x4   :  { %s30_s16 = sshll.u32 %s1377_s15, 4  ;;  %s18_s18 = sshll.u32 %s1378_s17, 4  ;;  %s31_s16 = int_to_ptr.vmem [resolvable:$true] %s30_s16  ;;  %s1410_s18 = int_to_ptr.vmem [resolvable:$true] %s18_s18 }
   0x5   :  { %s1259_s21 = scalar_lea.hbm %s1599_s1, 256 }
   0x6   :  { %p1260_p0 = scmp.ne.s32.totalorder %s1599_s1, %s1259_s21  ;;  %p1263_p1 = scmp.lt.u32.totalorder %s1259_s21, %s1599_s1 }
   0x8   :  { %p1265_p2 = pnand %p1263_p1, %p1260_p0 }
   0xa   :  { %1268 = shalt.err (!%p1265_p2)
}
   0xb   :  { %s1269_s26 = scalar_lea.vmem %s31_s16, 256  ;;  %p1274_p4 = scmp.lt.s32.totalorder %s31_s16, %s31_s16 }
   0xc   :  { %p1270_p3 = scmp.ne.s32.totalorder %s31_s16, %s1269_s26  ;;  %p1275_p5 = scmp.lt.s32.totalorder %s1269_s26, %s1269_s26 }
   0xe   :  { %p1276_p6 = por %p1275_p5, %p1274_p4 }
  0x10   :  { %p1277_p7 = pnand %p1276_p6, %p1270_p3 }
  0x12   :  { %1280 = shalt.err (!%p1277_p7)
}
  0x13   :  { %s1379_s27 = smov 128   ;;  %s1380_s28 = smov 8  }
  0x14   :  { %36 = dma.hbm_to_vmem [thread:$0]  %s1599_s1, 256, %s31_s16, [#allocation6], %s1379_s27, %s1379_s27, %s1380_s28  }
  0x15   :  { %s1281_s7 = scalar_lea.hbm %s1598_s0, 256 }
  0x16   :  { %p1282_p8 = scmp.ne.s32.totalorder %s1598_s0, %s1281_s7  ;;  %p1285_p9 = scmp.lt.u32.totalorder %s1281_s7, %s1598_s0 }
  0x18   :  { %p1287_p10 = pnand %p1285_p9, %p1282_p8 }
  0x1a   :  { %1290 = shalt.err (!%p1287_p10)
}
  0x1b   :  { %s1291_s12 = scalar_lea.vmem %s1410_s18, 256  ;;  %p1296_p12 = scmp.lt.s32.totalorder %s1410_s18, %s1410_s18 }
  0x1c   :  { %p1292_p11 = scmp.ne.s32.totalorder %s1410_s18, %s1291_s12  ;;  %p1297_p13 = scmp.lt.s32.totalorder %s1291_s12, %s1291_s12 }
  0x1e   :  { %p1298_p0 = por %p1297_p13, %p1296_p12 }
  0x20   :  { %p1299_p1 = pnand %p1298_p0, %p1292_p11 }
  0x22   :  { %1302 = shalt.err (!%p1299_p1)
}
  0x23   :  { %24 = dma.hbm_to_vmem [thread:$0]  %s1598_s0, 256, %s1410_s18, [#allocation3], %s1379_s27, %s1379_s27, %s1380_s28  }
  0x24   :  { %s1381_s14 = smov [#allocation7]   ;;  %s1382_s16 = smov [#allocation8]  }
  0x25   :  { %s42_s15 = sshll.u32 %s1381_s14, 4  ;;  %s54_s17 = sshll.u32 %s1382_s16, 4  ;;  %s43_s15 = int_to_ptr.vmem [resolvable:$true] %s42_s15  ;;  %s1447_s17 = int_to_ptr.vmem [resolvable:$true] %s54_s17 }
  0x26   :  { %s1303_s21 = scalar_lea.hbm %s1600_s2, 256 }
  0x27   :  { %p1304_p2 = scmp.ne.s32.totalorder %s1600_s2, %s1303_s21  ;;  %p1307_p3 = scmp.lt.u32.totalorder %s1303_s21, %s1600_s2 }
  0x29   :  { %p1309_p4 = pnand %p1307_p3, %p1304_p2 }
  0x2b   :  { %1312 = shalt.err (!%p1309_p4)
}
  0x2c   :  { %s1313_s0 = scalar_lea.vmem %s43_s15, 256  ;;  %p1318_p6 = scmp.lt.s32.totalorder %s43_s15, %s43_s15 }
  0x2d   :  { %p1314_p5 = scmp.ne.s32.totalorder %s43_s15, %s1313_s0  ;;  %p1319_p7 = scmp.lt.s32.totalorder %s1313_s0, %s1313_s0 }
  0x2f   :  { %p1320_p8 = por %p1319_p7, %p1318_p6 }
  0x31   :  { %p1321_p9 = pnand %p1320_p8, %p1314_p5 }
  0x33   :  { %1324 = shalt.err (!%p1321_p9)
}
  0x34   :  { %48 = dma.hbm_to_vmem [thread:$0]  %s1600_s2, 256, %s43_s15, [#allocation6], %s1379_s27, %s1379_s27, %s1380_s28  }
  0x35   :  { %s1325_s5 = scalar_lea.hbm %s1601_s3, 2048 }
  0x36   :  { %p1326_p10 = scmp.ne.s32.totalorder %s1601_s3, %s1325_s5  ;;  %p1329_p11 = scmp.lt.u32.totalorder %s1325_s5, %s1601_s3 }
  0x38   :  { %p1331_p12 = pnand %p1329_p11, %p1326_p10 }
  0x3a   :  { %1334 = shalt.err (!%p1331_p12)
}
  0x3b   :  { %s1335_s10 = scalar_lea.vmem %s1447_s17, 2048  ;;  %p1340_p0 = scmp.lt.s32.totalorder %s1447_s17, %s1447_s17 }
  0x3c   :  { %p1336_p13 = scmp.ne.s32.totalorder %s1447_s17, %s1335_s10  ;;  %p1341_p1 = scmp.lt.s32.totalorder %s1335_s10, %s1335_s10 }
  0x3e   :  { %p1342_p2 = por %p1341_p1, %p1340_p0 }
  0x40   :  { %p1343_p3 = pnand %p1342_p2, %p1336_p13 }
  0x42   :  { %1346 = shalt.err (!%p1343_p3)
}
  0x43   :  { %60 = dma.hbm_to_vmem [thread:$0]  %s1601_s3, 2048, %s1447_s17, [#allocation9], %s1379_s27, %s1379_s27, %s1380_s28  }
  0x44   :  { %1369 = dma.done.wait [#allocation3], 256  }
  0x45   :  { %1370 = vsyncadd [#allocation3], 4294967040 }
  0x46   :  { %1371 = dma.done.wait [#allocation6], 512  }
  0x47   :  { %1372 = vsyncadd [#allocation6], 4294966784 }
  0x48   :  { %1373 = dma.done.wait [#allocation9], 2048  }
  0x49   :  { %1374 = vsyncadd [#allocation9], 4294965248  ;;  %v1383_v0 = vmov 0.0   ;;  %v75_v1 = vld [vmem:[#allocation5] sm:$0xff]  ;;  %v76_v2 = vld [vmem:[#allocation5 + $0x8] sm:$0xff]  ;;  %vm85_vm0 = vcmask 130048  }
  0x4a   :  { %156 = vmatprep.mubr.f32.mxu0 %v1383_v0  ;;  %v73_v3 = vld [vmem:[#allocation2] sm:$0xff]  ;;  %v79_v4 = vmul.f32 %v75_v1, %v75_v1  ;;  %v80_v5 = vmul.f32 %v76_v2, %v76_v2  ;;  %v1073_v6 = vpack.c.bf16 %v76_v2, %v75_v1  ;;  %v74_v7 = vld [vmem:[#allocation2 + $0x8] sm:$0xff]  ;;  %v321_v13 = vld [vmem:[#allocation8] sm:$0xff]  ;;  %s1384_s3 = smov [#allocation10]   ;;  %vm772_vm2 = vcmask 0  }
  0x4b   :  { %v77_v8 = vmul.f32 %v73_v3, %v73_v3  ;;  %v78_v9 = vmul.f32 %v74_v7, %v74_v7  ;;  %v1075_v10 = vpack.c.bf16 %v74_v7, %v73_v3  ;;  %v81_v11 = vmul.f32 %v75_v1, %v73_v3  ;;  %v322_v14 = vld [vmem:[#allocation8 + $0x8] sm:$0xff]  ;;  %v323_v15 = vld [vmem:[#allocation8 + $0x10] sm:$0xff]  ;;  %v324_v18 = vld [vmem:[#allocation8 + $0x18] sm:$0xff]  ;;  %s780_s27 = sshll.u32 %s1384_s3, 4  ;;  %s781_s27 = int_to_ptr.vmem [resolvable:$true] %s780_s27 }
  0x4c   :  { %v82_v12 = vmul.f32 %v76_v2, %v74_v7  ;;  %1074 = vmatprep.subr.bf16.mxu0 %v1073_v6  ;;  %v1077_v16 = vpack.c.bf16 %v80_v5, %v79_v4  ;;  %v1484_v17 = vpack.c.bf16 %v322_v14, %v321_v13  ;;  %v83_v19 = vld [vmem:[#allocation7] sm:$0xff]  ;;  %v1486_v21 = vpack.c.bf16 %v324_v18, %v323_v15  ;;  %v325_v22 = vld [vmem:[#allocation8 + $0x20] sm:$0xff]  ;;  %v326_v23 = vld [vmem:[#allocation8 + $0x28] sm:$0xff]  ;;  %s1347_s12 = scalar_lea.vmem %s781_s27, 16  ;;  %s1351_s1 = scalar_lea.vmem %s781_s27, 32 }
  0x4d   :  { %1076 = vmatpush1.bf16.msra.mxu0 %v1075_v10  ;;  %v1079_v20 = vpack.c.bf16 %v78_v9, %v77_v8  ;;  %v1492_v25 = vpack.c.bf16 %v326_v23, %v325_v22  ;;  %v84_v26 = vld [vmem:[#allocation7 + $0x8] sm:$0xff]  ;;  %v327_v27 = vld [vmem:[#allocation8 + $0x30] sm:$0xff]  ;;  %v329_v30 = vld [vmem:[#allocation8 + $0x40] sm:$0xff]  ;;  %p1348_p4 = scmp.ne.s32.totalorder %s781_s27, %s1347_s12  ;;  %p1352_p5 = scmp.lt.s32.totalorder %s781_s27, %s781_s27 }
  0x4e   :  { %1078 = vmatprep.subr.bf16.mxu0 %v1077_v16  ;;  %v1081_v24 = vpack.c.bf16 %v82_v12, %v81_v11  ;;  %1086 = vmatprep.subr.bf16.mxu1 %v1484_v17  ;;  %v328_v28 = vld [vmem:[#allocation8 + $0x38] sm:$0xff]  ;;  %v330_v31 = vld [vmem:[#allocation8 + $0x48] sm:$0xff]  ;;  %v331_v33 = vld [vmem:[#allocation8 + $0x50] sm:$0xff]  ;;  %p1353_p6 = scmp.lt.s32.totalorder %s1351_s1, %s1347_s12 }
  0x4f   :  { %1088 = vmatpush3.bf16.msra.mxu1 %v1484_v17  ;;  %v1497_v29 = vpack.c.bf16 %v328_v28, %v327_v27  ;;  %v1502_v32 = vpack.c.bf16 %v330_v31, %v329_v30  ;;  %v332_v34 = vld [vmem:[#allocation8 + $0x58] sm:$0xff]  ;;  %v333_v36 = vld [vmem:[#allocation8 + $0x60] sm:$0xff]  ;;  %v334_v37 = vld [vmem:[#allocation8 + $0x68] sm:$0xff] }
  0x50   :  { %791 = vmatmul.mubr.msk.f32.vlgmr.msra.gmra.mrb[0].mxu0 %vm85_vm0, %v83_v19  ;;  %1090 = vmatprep.subr.bf16.mxu1 %v1486_v21  ;;  %v1508_v35 = vpack.c.bf16 %v332_v34, %v331_v33  ;;  %v1514_v38 = vpack.c.bf16 %v334_v37, %v333_v36  ;;  %v335_v39 = vld [vmem:[#allocation8 + $0x70] sm:$0xff]  ;;  %v336_v40 = vld [vmem:[#allocation8 + $0x78] sm:$0xff]  ;;  %p1354_p7 = por %p1353_p6, %p1352_p5 }
  0x51   :  { %162 = vmatprep.mubr.f32.mxu0 %v1383_v0  ;;  %1080 = vmatpush1.bf16.msra.mxu0 %v1079_v20  ;;  %v1532_v41 = vpack.c.bf16 %v336_v40, %v335_v39 }
  0x52   :  { %1082 = vmatprep.subr.bf16.mxu0 %v1081_v24  ;;  %p1355_p8 = pnand %p1354_p7, %p1348_p4 }
  0x53   :  { %1092 = vmatpush3.bf16.msra.mxu1 %v1486_v21 }
  0x54   :  { %792 = vmatmul.mubr.msk.f32.gmra.mrb[2].mxu0 %vm85_vm0, %v84_v26  ;;  %1094 = vmatprep.subr.bf16.mxu1 %v1492_v25 }
  0x55   :  { %233 = vmatprep.mubr.f32.mxu0 %v1383_v0 }
  0x57   :  { %1096 = vmatpush3.bf16.msra.mxu1 %v1492_v25 }
  0x58   :  { %793 = vmatmul.mubr.msk.f32.vlgmr.msra.gmra.mrb[4].mxu0 %vm85_vm0, %v83_v19  ;;  %1098 = vmatprep.subr.bf16.mxu1 %v1497_v29 }
  0x59   :  { %239 = vmatprep.mubr.f32.mxu0 %v1383_v0  ;;  %1084 = vmatpush3.bf16.msra.mxu0 %v1081_v24 }
  0x5a   :  { %1118 = vmatprep.subr.bf16.mxu0 %v1484_v17 }
  0x5b   :  { %1100 = vmatpush3.bf16.msra.mxu1 %v1497_v29 }
  0x5c   :  { %794 = vmatmul.mubr.msk.f32.gmra.mrb[6].mxu0 %vm85_vm0, %v84_v26  ;;  %1102 = vmatprep.subr.bf16.mxu1 %v1502_v32 }
  0x5d   :  { %895 = vmatprep.mubr.msk.f32.mxu0 %vm85_vm0, %v83_v19 }
  0x5f   :  { %1104 = vmatpush3.bf16.msra.mxu1 %v1502_v32 }
  0x60   :  { %896 = vmatmul.mubr.msk.f32.vlgmr.msra.gmra.mrb[8].mxu0 %vm85_vm0, %v84_v26  ;;  %1106 = vmatprep.subr.bf16.mxu1 %v1508_v35 }
  0x61   :  { %1120 = vmatpush3.bf16.msra.mxu0 %v1484_v17 }
  0x62   :  { %1122 = vmatprep.subr.bf16.mxu0 %v1486_v21 }
  0x63   :  { %1108 = vmatpush3.bf16.msra.mxu1 %v1508_v35 }
  0x64   :  { %1110 = vmatprep.subr.bf16.mxu1 %v1514_v38 }
  0x65   :  { %1124 = vmatpush3.bf16.msra.mxu0 %v1486_v21 }
  0x66   :  { %1126 = vmatprep.subr.bf16.mxu0 %v1492_v25 }
  0x67   :  { %1112 = vmatpush3.bf16.msra.mxu1 %v1514_v38 }
  0x68   :  { %1114 = vmatprep.subr.bf16.mxu1 %v1532_v41 }
  0x69   :  { %1128 = vmatpush3.bf16.msra.mxu0 %v1492_v25 }
  0x6a   :  { %1130 = vmatprep.subr.bf16.mxu0 %v1497_v29 }
  0x6b   :  { %1116 = vmatpush3.bf16.msra.mxu1 %v1532_v41 }
  0x6c   :  { %1150 = vmatprep.subr.bf16.mxu1 %v1484_v17 }
  0x6d   :  { %1132 = vmatpush3.bf16.msra.mxu0 %v1497_v29 }
  0x6e   :  { %1134 = vmatprep.subr.bf16.mxu0 %v1502_v32 }
  0x71   :  { %1136 = vmatpush3.bf16.msra.mxu0 %v1502_v32 }
  0x72   :  { %1138 = vmatprep.subr.bf16.mxu0 %v1508_v35 }
  0x75   :  { %1140 = vmatpush3.bf16.msra.mxu0 %v1508_v35 }
  0x76   :  { %1142 = vmatprep.subr.bf16.mxu0 %v1514_v38 }
  0x79   :  { %1144 = vmatpush3.bf16.msra.mxu0 %v1514_v38 }
  0x7a   :  { %1146 = vmatprep.subr.bf16.mxu0 %v1532_v41 }
  0x7d   :  { %1148 = vmatpush3.bf16.msra.mxu0 %v1532_v41 }
  0x7e   :  { %1182 = vmatprep.subr.bf16.mxu0 %v1484_v17 }
 0x123   :  { %v158_v42 = vpop.f32.mrb[0].mxu0 }
 0x124   :  { %v160_v43 = vpop.f32.mrb[1].mxu0  ;;  %930 = vmatprep.mubr.f32.mxu1 %v158_v42 }
 0x125   :  { %965 = vmatprep.mubr.f32.mxu0 %v160_v43 }
 0x127   :  { %v164_v44 = vpop.f32.mrb[2].mxu0 }
 0x128   :  { %v166_v45 = vpop.f32.mrb[3].mxu0  ;;  %931 = vmatmul.mubr.f32.vlgmr.msra.gmra.mrb[0].mxu1 %v164_v44 }
 0x129   :  { %1152 = vmatpush3.bf16.msra.mxu1 %v1484_v17  ;;  %966 = vmatmul.mubr.f32.vlgmr.msra.gmra.mrb[10].mxu0 %v166_v45 }
 0x12a   :  { %1184 = vmatpush3.bf16.msra.mxu0 %v1484_v17  ;;  %1154 = vmatprep.subr.bf16.mxu1 %v1486_v21 }
 0x12b   :  { %1186 = vmatprep.subr.bf16.mxu0 %v1486_v21  ;;  %v235_v46 = vpop.f32.mrb[4].mxu0 }
 0x12c   :  { %v237_v47 = vpop.f32.mrb[5].mxu0  ;;  %1000 = vmatprep.mubr.f32.mxu1 %v235_v46 }
 0x12d   :  { %1156 = vmatpush3.bf16.msra.mxu1 %v1486_v21  ;;  %1035 = vmatprep.mubr.f32.mxu0 %v237_v47 }
 0x12e   :  { %1188 = vmatpush3.bf16.msra.mxu0 %v1486_v21  ;;  %1158 = vmatprep.subr.bf16.mxu1 %v1492_v25 }
 0x12f   :  { %1190 = vmatprep.subr.bf16.mxu0 %v1492_v25  ;;  %v241_v48 = vpop.f32.mrb[6].mxu0 }
 0x130   :  { %v243_v49 = vpop.f32.mrb[7].mxu0 }
 0x131   :  { %1160 = vmatpush3.bf16.msra.mxu1 %v1492_v25 }
 0x132   :  { %1192 = vmatpush3.bf16.msra.mxu0 %v1492_v25  ;;  %1162 = vmatprep.subr.bf16.mxu1 %v1497_v29 }
 0x133   :  { %1194 = vmatprep.subr.bf16.mxu0 %v1497_v29  ;;  %v897_v50 = vpop.f32.mrb[8].mxu0 }
 0x134   :  { %v312_v51 = vpop.f32.mrb[9].mxu0 }
 0x135   :  { %1164 = vmatpush3.bf16.msra.mxu1 %v1497_v29 }
 0x136   :  { %1196 = vmatpush3.bf16.msra.mxu0 %v1497_v29  ;;  %1166 = vmatprep.subr.bf16.mxu1 %v1502_v32 }
 0x137   :  { %1198 = vmatprep.subr.bf16.mxu0 %v1502_v32 }
 0x139   :  { %1168 = vmatpush3.bf16.msra.mxu1 %v1502_v32 }
 0x13a   :  { %1200 = vmatpush3.bf16.msra.mxu0 %v1502_v32  ;;  %1170 = vmatprep.subr.bf16.mxu1 %v1508_v35 }
 0x13b   :  { %1202 = vmatprep.subr.bf16.mxu0 %v1508_v35 }
 0x13d   :  { %1172 = vmatpush3.bf16.msra.mxu1 %v1508_v35 }
 0x13e   :  { %1204 = vmatpush3.bf16.msra.mxu0 %v1508_v35  ;;  %1174 = vmatprep.subr.bf16.mxu1 %v1514_v38 }
 0x13f   :  { %1206 = vmatprep.subr.bf16.mxu0 %v1514_v38 }
 0x141   :  { %1176 = vmatpush3.bf16.msra.mxu1 %v1514_v38 }
 0x142   :  { %1208 = vmatpush3.bf16.msra.mxu0 %v1514_v38  ;;  %1178 = vmatprep.subr.bf16.mxu1 %v1532_v41 }
 0x143   :  { %1210 = vmatprep.subr.bf16.mxu0 %v1532_v41 }
 0x145   :  { %1180 = vmatpush3.bf16.msra.mxu1 %v1532_v41 }
 0x146   :  { %1212 = vmatpush3.bf16.msra.mxu0 %v1532_v41  ;;  %1214 = vmatprep.subr.bf16.mxu1 %v1484_v17 }
 0x148   :  { %1001 = vmatmul.mubr.f32.vlgmr.msra.gmra.mrb[2].mxu1 %v241_v48 }
 0x149   :  { %1036 = vmatmul.mubr.f32.vlgmr.msra.gmra.mrb[12].mxu0 %v243_v49  ;;  %1216 = vmatpush3.bf16.msra.mxu1 %v1484_v17  ;;  %v755_v17 = vlaneseq }
 0x14a   :  { %1218 = vmatprep.subr.bf16.mxu1 %v1486_v21  ;;  %1070 = vmatprep.mubr.f32.mxu1 %v312_v51 }
 0x14d   :  { %1220 = vmatpush3.bf16.msra.mxu1 %v1486_v21 }
 0x14e   :  { %1222 = vmatprep.subr.bf16.mxu1 %v1492_v25 }
 0x151   :  { %1224 = vmatpush3.bf16.msra.mxu1 %v1492_v25  ;;  %v756_v25 = vand.u32 127, %v755_v17 }
 0x152   :  { %1226 = vmatprep.subr.bf16.mxu1 %v1497_v29 }
 0x153   :  { %vm758_vm1 = vcmp.lt.s32.totalorder %v756_v25, 96 }
 0x155   :  { %1228 = vmatpush3.bf16.msra.mxu1 %v1497_v29 }
 0x156   :  { %1230 = vmatprep.subr.bf16.mxu1 %v1502_v32 }
 0x159   :  { %1232 = vmatpush3.bf16.msra.mxu1 %v1502_v32 }
 0x15a   :  { %1234 = vmatprep.subr.bf16.mxu1 %v1508_v35 }
 0x15d   :  { %1236 = vmatpush3.bf16.msra.mxu1 %v1508_v35 }
 0x15e   :  { %1238 = vmatprep.subr.bf16.mxu1 %v1514_v38 }
 0x161   :  { %1240 = vmatpush3.bf16.msra.mxu1 %v1514_v38 }
 0x162   :  { %1242 = vmatprep.subr.bf16.mxu1 %v1532_v41 }
 0x165   :  { %1244 = vmatpush3.bf16.msra.mxu1 %v1532_v41 }
 0x168   :  { %1071 = vmatmul.mubr.f32.vlgmr.msra.gmra.mrb[4].mxu1 %v897_v50 }
 0x1fb   :  { %v932_v52 = vpop.f32.mrb[0].mxu1 }
 0x1fc   :  { %v713_v53 = vmul.f32 %v932_v52, %v932_v52  ;;  %v403_v54 = vpop.f32.mrb[1].mxu1  ;;  %v967_v55 = vpop.f32.mrb[10].mxu0 }
 0x1fd   :  { %v712_v56 = vmul.f32 %v403_v54, %v403_v54  ;;  %v715_v57 = vmul.f32 %v967_v55, %v967_v55  ;;  %v717_v58 = vmul.f32 %v967_v55, %v932_v52  ;;  %v478_v59 = vpop.f32.mrb[11].mxu0 }
 0x1fe   :  { %v714_v60 = vmul.f32 %v478_v59, %v478_v59  ;;  %v716_v61 = vmul.f32 %v478_v59, %v403_v54 }
 0x1ff   :  { %v735_v62 = vadd.f32 %v715_v57, %v713_v53  ;;  %v725_v18 = vmul.f32 2.0, %v717_v58 }
 0x200   :  { %v734_v63 = vadd.f32 %v714_v60, %v712_v56  ;;  %v724_v21 = vmul.f32 2.0, %v716_v61 }
 0x201   :  { %v737_v10 = vadd.f32 0.0001, %v735_v62  ;;  %v727_v26 = vadd.f32 0.0001, %v725_v18 }
 0x202   :  { %v736_v12 = vadd.f32 0.0001, %v734_v63  ;;  %v726_v28 = vadd.f32 0.0001, %v724_v21 }
 0x21b   :  { %v1002_v0 = vpop.f32.mrb[2].mxu1 }
 0x21c   :  { %v719_v1 = vsub.f32 %v1002_v0, %v713_v53  ;;  %v553_v2 = vpop.f32.mrb[3].mxu1  ;;  %v1037_v3 = vpop.f32.mrb[12].mxu0 }
 0x21d   :  { %v718_v4 = vsub.f32 %v553_v2, %v712_v56  ;;  %v721_v5 = vsub.f32 %v1037_v3, %v715_v57  ;;  %v628_v6 = vpop.f32.mrb[13].mxu0 }
 0x21e   :  { %v720_v7 = vsub.f32 %v628_v6, %v714_v60 }
 0x21f   :  { %v739_v8 = vadd.f32 %v721_v5, %v719_v1 }
 0x220   :  { %v738_v9 = vadd.f32 %v720_v7, %v718_v4 }
 0x221   :  { %v741_v11 = vadd.f32 0.0009, %v739_v8 }
 0x222   :  { %v740_v13 = vadd.f32 0.0009, %v738_v9 }
 0x223   :  { %v743_v14 = vmul.f32 %v741_v11, %v737_v10 }
 0x224   :  { %v742_v15 = vmul.f32 %v740_v13, %v736_v12 }
 0x225   :  { %1255 = vrcp.f32 %v743_v14 }
 0x226   :  { %1257 = vrcp.f32 %v742_v15 }
 0x22f   :  { %v1256_v31 = vpop.eup %1255 }
 0x230   :  { %v1258_v33 = vpop.eup %1257 }
 0x23b   :  { %v1072_v16 = vpop.f32.mrb[4].mxu1 }
 0x23c   :  { %v723_v19 = vsub.f32 %v1072_v16, %v717_v58  ;;  %v703_v20 = vpop.f32.mrb[5].mxu1 }
 0x23d   :  { %v722_v22 = vsub.f32 %v703_v20, %v716_v61 }
 0x23e   :  { %v729_v23 = vmul.f32 2.0, %v723_v19 }
 0x23f   :  { %v728_v24 = vmul.f32 2.0, %v722_v22 }
 0x240   :  { %v731_v27 = vadd.f32 0.0009, %v729_v23 }
 0x241   :  { %v730_v29 = vadd.f32 0.0009, %v728_v24 }
 0x242   :  { %v733_v30 = vmul.f32 %v731_v27, %v727_v26 }
 0x243   :  { %v732_v32 = vmul.f32 %v730_v29, %v726_v28 }
 0x244   :  { %v747_v34 = vmul.f32 %v1256_v31, %v733_v30 }
 0x245   :  { %v746_v35 = vmul.f32 %v1258_v33, %v732_v32 }
 0x246   :  { %v760_v36 = vsel %vm758_vm1, %v747_v34, 0.0 }
 0x247   :  { %v759_v37 = vsel %vm758_vm1, %v746_v35, 0.0 }
 0x248   :  { %v761_v38 = vadd.f32 %v760_v36, %v759_v37 }
 0x24a   :  { %762 = vadd.xlane.f32.xlu0 %v761_v38 }
 0x2d7   :  { %v763_v39 = vpop.xlane.xlu0 %762 }
 0x2d8   :  { %v764_v40 = vrot.slane %v763_v39, 4 }
 0x2da   :  { %v765_v41 = vadd.f32 %v764_v40, %v763_v39 }
 0x2dc   :  { %v766_v42 = vrot.slane %v765_v41, 2 }
 0x2de   :  { %v767_v43 = vadd.f32 %v766_v42, %v765_v41 }
 0x2e0   :  { %v768_v44 = vrot.slane %v767_v43, 1 }
 0x2e2   :  { %v769_v45 = vadd.f32 %v768_v44, %v767_v43 }
 0x2e4   :  { %1245 = vpush %v769_v45 }
 0x315   :  { %s1246_s28 = spop %1245 }
 0x316   :  { %v771_v46 = vstv %s1246_s28 }
 0x317   :  { %773 = vst.msk [vmem:[#allocation10] sm:$0x1] %vm772_vm2, %v771_v46 }
 0x318   :  { %1358 = shalt.err (!%p1355_p8)
}
 0x319   :  { %s1359_s15 = scalar_lea.hbm %s1602_s4, 16 }
 0x31a   :  { %p1360_p9 = scmp.ne.s32.totalorder %s1602_s4, %s1359_s15  ;;  %p1363_p10 = scmp.lt.u32.totalorder %s1359_s15, %s1602_s4 }
 0x31c   :  { %p1365_p11 = pnand %p1363_p10, %p1360_p9 }
 0x31e   :  { %1368 = shalt.err (!%p1365_p11)
}
 0x31f   :  { %783 = dma.vmem_to_hbm [thread:$0]  %s781_s27, 16, %s1602_s4, [#allocation4]  }
 0x320   :  { %1375 = dma.done.wait [#allocation4], 16  }
 0x321   :  { %1376 = vsyncadd [#allocation4], 4294967280 }
 0x322   :  { %787 = vsyncpa [#allocation3], 1 }
 0x323   :  { %788 = vsyncpa [#allocation6], 1 }
 0x324   :  { %789 = vsyncpa [#allocation9], 1 }
 0x325   :  { %790 = vsyncpa [#allocation4], 1 }

</bundles_post_ra>
